<compile_context>
chip_gen: v7x
topology: tpu7x:2x2x1
jax: 0.10.0
libtpu: 0.0.40
codegen_flags: <defaults>
</compile_context>

<pallas_src>
import jax
import jax.numpy as jnp
from jax import lax
from jax.experimental import pallas as pl
from jax.experimental.pallas import tpu as pltpu


def _round_up(x, m):
    return (x + m - 1) // m * m


def residual_linear_kernel(x_ref, w_ref, b_ref, xres_ref, o_ref, acc_ref):
    """Grid = (row tiles i, out-col tiles j, K-reduction tiles k).

    x_ref    : (tm, tk)  x rows i, K block k
    w_ref    : (tn, tk)  weight in PyTorch (out, in) layout: rows j, cols k
    b_ref    : (1,  tn)  bias block j
    xres_ref : (tm, tn)  residual x block (i, j)
    o_ref    : (tm, tn)  output block (i, j)
    acc_ref  : (tm, tn)  f32 VMEM accumulator, resident across k
    """
    k = pl.program_id(2)

    @pl.when(k == 0)
    def _():
        acc_ref[...] = jnp.zeros_like(acc_ref)

    # Contract x dim 1 against weight dim 1 (i.e. x @ W.T) on the MXU.
    acc_ref[...] += lax.dot_general(
        x_ref[...], w_ref[...],
        dimension_numbers=(((1,), (1,)), ((), ())),
        preferred_element_type=jnp.float32)

    @pl.when(k == pl.num_programs(2) - 1)
    def _():
        y = acc_ref[...] + b_ref[...] + xres_ref[...].astype(jnp.float32)
        o_ref[...] = y.astype(o_ref.dtype)


def residual_linear(x, weight, bias=None, *, tm=None):
    """out = x @ weight.T + bias + x.

    x      : (N, F)
    weight : (F, F) PyTorch nn.Linear layout (out_features, in_features)
    bias   : (F,) or None
    """
    N, F = x.shape
    assert weight.shape == (F, F)

    # Lane-dense feature blocks: round F up to a multiple of 128.  For real
    # model sizes (F % 128 == 0) these pads are no-ops; in production the
    # parameters would be stored pre-padded so no per-call copy happens.
    F_pad = _round_up(F, 128)

    if bias is None:
        bias = jnp.zeros((F,), dtype=jnp.float32)

    if F_pad != F:
        x_p = jnp.pad(x, ((0, 0), (0, F_pad - F)))
        w_p = jnp.pad(weight, ((0, F_pad - F), (0, F_pad - F)))
        b_p = jnp.pad(bias, (0, F_pad - F))
    else:
        x_p, w_p, b_p = x, weight, bias
    b2d = b_p.reshape(1, F_pad).astype(jnp.float32)

    # Row tile: multiple of 8 (or the full batch when it is small) so large
    # batches pipeline and, on v7x, shard across the two TensorCores.
    if tm is None:
        tm = 256 if N > 256 else N
    # Feature tiles: 256 matches v6e/v7x MXU geometry; 128-aligned for v5e.
    # Both always divide F_pad exactly (no garbage partial K blocks).
    tn = 256 if F_pad % 256 == 0 else 128
    tk = 256 if F_pad % 256 == 0 else 128

    grid = (pl.cdiv(N, tm), F_pad // tn, F_pad // tk)

    itemsize = jnp.dtype(x.dtype).itemsize
    cost = pl.CostEstimate(
        flops=2 * N * F * F,
        transcendentals=0,
        bytes_accessed=itemsize * (2 * N * F) + 4 * (F * F + F),
    )

    out = pl.pallas_call(
        residual_linear_kernel,
        out_shape=jax.ShapeDtypeStruct((N, F_pad), x.dtype),
        grid_spec=pltpu.PrefetchScalarGridSpec(
            num_scalar_prefetch=0,
            grid=grid,
            in_specs=[
                pl.BlockSpec((tm, tk), lambda i, j, k: (i, k)),  # x (matmul)
                pl.BlockSpec((tn, tk), lambda i, j, k: (j, k)),  # weight tile
                pl.BlockSpec((1, tn), lambda i, j, k: (0, j)),   # bias
                pl.BlockSpec((tm, tn), lambda i, j, k: (i, j)),  # x (residual)
            ],
            out_specs=pl.BlockSpec((tm, tn), lambda i, j, k: (i, j)),
            scratch_shapes=[pltpu.VMEM((tm, tn), jnp.float32)],
        ),
        compiler_params=pltpu.CompilerParams(
            dimension_semantics=("parallel", "parallel", "arbitrary")),
        cost_estimate=cost,
    )(x_p, w_p, b2d, x_p)

    if F_pad != F:
        out = out[:, :F]
    return out


if __name__ == "__main__":
    key = jax.random.PRNGKey(0)
    k_x, k_w, k_b = jax.random.split(key, 3)

    batch, in_feature = 8, 32

    # Deterministic parameter init (PyTorch nn.Linear-style uniform bounds).
    bound = 1.0 / (in_feature ** 0.5)
    weight = jax.random.uniform(k_w, (in_feature, in_feature),
                                minval=-bound, maxval=bound,
                                dtype=jnp.float32)  # (out, in) PyTorch layout
    bias = jax.random.uniform(k_b, (in_feature,),
                              minval=-bound, maxval=bound, dtype=jnp.float32)
    x = jax.random.normal(k_x, (batch, in_feature), dtype=jnp.float32)

    out = residual_linear(x, weight, bias)
    out = jax.block_until_ready(out)

    # Pure-JAX reference check (same math as the PyTorch forward).
    ref = x @ weight.T + bias + x
    assert jnp.allclose(out, ref, atol=1e-5, rtol=1e-5), "mismatch vs reference"

    print("KERNEL_OK")
</pallas_src>

<mosaic_0001>
module attributes {stable_mosaic.version = 11 : i64} {
  func.func @residual_linear_kernel(%arg0: i32, %arg1: i32, %arg2: i32, %arg3: memref<8x128xf32, #tpu.memory_space<vmem>>, %arg4: memref<128x128xf32, #tpu.memory_space<vmem>>, %arg5: memref<1x128xf32, #tpu.memory_space<vmem>>, %arg6: memref<8x128xf32, #tpu.memory_space<vmem>>, %arg7: memref<8x128xf32, #tpu.memory_space<vmem>>, %arg8: memref<8x128xf32, #tpu.memory_space<vmem>>) attributes {dimension_semantics = [#tpu.dimension_semantics<parallel>, #tpu.dimension_semantics<parallel>, #tpu.dimension_semantics<arbitrary>], iteration_bounds = array<i64: 1, 1, 1>, scalar_prefetch = 0 : i64, scratch_operands = 1 : i64, tpu.core_type = #tpu.core_type<tc>, window_params = [{transform_indices = @transform_0, window_bounds = array<i64: 8, 128>}, {transform_indices = @transform_1, window_bounds = array<i64: 128, 128>}, {transform_indices = @transform_2, window_bounds = array<i64: 1, 128>}, {transform_indices = @transform_3, window_bounds = array<i64: 8, 128>}, {transform_indices = @transform_4, window_bounds = array<i64: 8, 128>}]} {
    %c0_i32 = arith.constant 0 : i32
    %0 = arith.cmpi eq, %arg2, %c0_i32 : i32
    %1 = arith.extui %0 : i1 to i32
    %c0_i32_0 = arith.constant 0 : i32
    %2 = arith.cmpi ne, %1, %c0_i32_0 : i32
    scf.if %2 {
      %cst_10 = arith.constant 0.000000e+00 : f32
      %12 = vector.broadcast %cst_10 : f32 to vector<8x128xf32>
      %c0_11 = arith.constant 0 : index
      %c0_12 = arith.constant 0 : index
      %13 = vector.load %arg8[%c0_11, %c0_12] : memref<8x128xf32, #tpu.memory_space<vmem>>, vector<8x128xf32>
      tpu.vector_store %arg8[%c0_11, %c0_12], %12 {strides = array<i32>} : memref<8x128xf32, #tpu.memory_space<vmem>>, vector<8x128xf32>,
    } else {
    }
    %c0 = arith.constant 0 : index
    %c0_1 = arith.constant 0 : index
    %3 = vector.load %arg8[%c0, %c0_1] : memref<8x128xf32, #tpu.memory_space<vmem>>, vector<8x128xf32>
    %c0_2 = arith.constant 0 : index
    %c0_3 = arith.constant 0 : index
    %4 = vector.load %arg3[%c0_2, %c0_3] : memref<8x128xf32, #tpu.memory_space<vmem>>, vector<8x128xf32>
    %c0_4 = arith.constant 0 : index
    %c0_5 = arith.constant 0 : index
    %5 = vector.load %arg4[%c0_4, %c0_5] : memref<128x128xf32, #tpu.memory_space<vmem>>, vector<128x128xf32>
    %cst = arith.constant dense<0.000000e+00> : vector<8x128xf32>
    %6 = tpu.matmul %4, %5, %cst {dimension_numbers = #tpu.dot_dimension_numbers<[1], [1], [0], [0], [0, 0, 1, 0], [], []>} : vector<8x128xf32>, vector<128x128xf32>, vector<8x128xf32> -> vector<8x128xf32>
    %7 = arith.addf %3, %6 : vector<8x128xf32>
    %c0_6 = arith.constant 0 : index
    %c0_7 = arith.constant 0 : index
    %8 = vector.load %arg8[%c0_6, %c0_7] : memref<8x128xf32, #tpu.memory_space<vmem>>, vector<8x128xf32>
    tpu.vector_store %arg8[%c0_6, %c0_7], %7 {strides = array<i32>} : memref<8x128xf32, #tpu.memory_space<vmem>>, vector<8x128xf32>,
    %c0_i32_8 = arith.constant 0 : i32
    %9 = arith.cmpi eq, %arg2, %c0_i32_8 : i32
    %10 = arith.extui %9 : i1 to i32
    %c0_i32_9 = arith.constant 0 : i32
    %11 = arith.cmpi ne, %10, %c0_i32_9 : i32
    scf.if %11 {
      %c0_10 = arith.constant 0 : index
      %c0_11 = arith.constant 0 : index
      %12 = vector.load %arg8[%c0_10, %c0_11] : memref<8x128xf32, #tpu.memory_space<vmem>>, vector<8x128xf32>
      %c0_12 = arith.constant 0 : index
      %c0_13 = arith.constant 0 : index
      %13 = vector.load %arg5[%c0_12, %c0_13] : memref<1x128xf32, #tpu.memory_space<vmem>>, vector<1x128xf32>
      %14 = vector.broadcast %13 : vector<1x128xf32> to vector<8x128xf32>
      %15 = arith.addf %12, %14 : vector<8x128xf32>
      %c0_14 = arith.constant 0 : index
      %c0_15 = arith.constant 0 : index
      %16 = vector.load %arg6[%c0_14, %c0_15] : memref<8x128xf32, #tpu.memory_space<vmem>>, vector<8x128xf32>
      %17 = arith.addf %15, %16 : vector<8x128xf32>
      %c0_16 = arith.constant 0 : index
      %c0_17 = arith.constant 0 : index
      %18 = vector.load %arg7[%c0_16, %c0_17] : memref<8x128xf32, #tpu.memory_space<vmem>>, vector<8x128xf32>
      tpu.vector_store %arg7[%c0_16, %c0_17], %17 {strides = array<i32>} : memref<8x128xf32, #tpu.memory_space<vmem>>, vector<8x128xf32>,
    } else {
    }
    return
  }
  func.func @transform_0(%arg0: i32, %arg1: i32, %arg2: i32) -> (i32, i32) {
    %c0_i32 = arith.constant 0 : i32
    return %arg0, %arg2 : i32, i32
  }
  func.func @transform_1(%arg0: i32, %arg1: i32, %arg2: i32) -> (i32, i32) {
    %c0_i32 = arith.constant 0 : i32
    return %arg1, %arg2 : i32, i32
  }
  func.func @transform_2(%arg0: i32, %arg1: i32, %arg2: i32) -> (i32, i32) {
    %c0_i32 = arith.constant 0 : i32
    %c0_i32_0 = arith.constant 0 : i32
    return %c0_i32, %arg1 : i32, i32
  }
  func.func @transform_3(%arg0: i32, %arg1: i32, %arg2: i32) -> (i32, i32) {
    %c0_i32 = arith.constant 0 : i32
    return %arg0, %arg1 : i32, i32
  }
  func.func @transform_4(%arg0: i32, %arg1: i32, %arg2: i32) -> (i32, i32) {
    %c0_i32 = arith.constant 0 : i32
    return %arg0, %arg1 : i32, i32
  }
}

</mosaic_0001>

<bundles_post_ra>
// kernel: tpu_custom_call.1
= control target key start
LH: loop header
LB: loop body
LE: loop exit
PB: predicated region body
PF: predicated region fallthrough
CT: control target
= control target key end

     0   :  { %9 = vsyncpa [#allocation4], 0  ;;  %s409_s0 = inlined_call_operand.hbm [shape: f32[8,128], index: 0, kind: input, shape index: {}]   ;;  %s410_s1 = inlined_call_operand.hbm [shape: f32[128,128], index: 1, kind: input, shape index: {}]   ;;  %s411_s2 = inlined_call_operand.vmem [shape: f32[1,128], index: 2, kind: input, shape index: {}]   ;;  %s412_s3 = inlined_call_operand.vmem [shape: f32[8,128], index: 3, kind: input, shape index: {}]   ;;  %s413_s4 = inlined_call_operand.hbm [shape: f32[8,128], index: 4, kind: output, shape index: {}]  }
   0x1   :  { %10 = vsyncpa [#allocation7], 0 }
   0x2   :  { %11 = vsyncpa [#allocation5], 0  ;;  %s327_s15 = smov [#allocation3]   ;;  %s328_s17 = smov [#allocation6]  }
   0x3   :  { %s18_s16 = sshll.u32 %s327_s15, 4  ;;  %s27_s18 = sshll.u32 %s328_s17, 4  ;;  %s19_s16 = int_to_ptr.vmem [resolvable:$true] %s18_s16  ;;  %s360_s18 = int_to_ptr.vmem [resolvable:$true] %s27_s18 }
   0x4   :  { %s255_s21 = scalar_lea.hbm %s409_s0, 128 }
   0x5   :  { %p256_p0 = scmp.ne.s32.totalorder %s409_s0, %s255_s21  ;;  %p259_p1 = scmp.lt.u32.totalorder %s255_s21, %s409_s0 }
   0x7   :  { %p261_p2 = pnand %p259_p1, %p256_p0 }
   0x9   :  { %264 = shalt.err (!%p261_p2)
}
   0xa   :  { %s265_s26 = scalar_lea.vmem %s19_s16, 128  ;;  %p270_p4 = scmp.lt.s32.totalorder %s19_s16, %s19_s16 }
   0xb   :  { %p266_p3 = scmp.ne.s32.totalorder %s19_s16, %s265_s26  ;;  %p271_p5 = scmp.lt.s32.totalorder %s265_s26, %s265_s26 }
   0xd   :  { %p272_p6 = por %p271_p5, %p270_p4 }
   0xf   :  { %p273_p7 = pnand %p272_p6, %p266_p3 }
  0x11   :  { %276 = shalt.err (!%p273_p7)
}
  0x12   :  { %21 = dma.hbm_to_vmem [thread:$0]  %s409_s0, 128, %s19_s16, [#allocation4]  }
  0x13   :  { %s277_s5 = scalar_lea.hbm %s410_s1, 2048 }
  0x14   :  { %p278_p8 = scmp.ne.s32.totalorder %s410_s1, %s277_s5  ;;  %p281_p9 = scmp.lt.u32.totalorder %s277_s5, %s410_s1 }
  0x16   :  { %p283_p10 = pnand %p281_p9, %p278_p8 }
  0x18   :  { %286 = shalt.err (!%p283_p10)
}
  0x19   :  { %s287_s10 = scalar_lea.vmem %s360_s18, 2048  ;;  %p292_p12 = scmp.lt.s32.totalorder %s360_s18, %s360_s18 }
  0x1a   :  { %p288_p11 = scmp.ne.s32.totalorder %s360_s18, %s287_s10  ;;  %p293_p13 = scmp.lt.s32.totalorder %s287_s10, %s287_s10 }
  0x1c   :  { %p294_p0 = por %p293_p13, %p292_p12 }
  0x1e   :  { %p295_p1 = pnand %p294_p0, %p288_p11 }
  0x20   :  { %298 = shalt.err (!%p295_p1)
}
  0x21   :  { %s329_s0 = smov 128   ;;  %s330_s11 = smov 8  }
  0x22   :  { %33 = dma.hbm_to_vmem [thread:$0]  %s410_s1, 2048, %s360_s18, [#allocation7], %s329_s0, %s329_s0, %s330_s11  }
  0x23   :  { %321 = dma.done.wait [#allocation4], 128  }
  0x24   :  { %322 = vsyncadd [#allocation4], 4294967168 }
  0x25   :  { %323 = dma.done.wait [#allocation7], 2048  }
  0x26   :  { %324 = vsyncadd [#allocation7], 4294965248  ;;  %v331_v0 = vmov 0.0|0.0   ;;  %vm332_vm0 = vmmov 0   ;;  %v333_v1 = vmov 0.0   ;;  %v51_v2 = vld [vmem:[#allocation6] sm:$0xff] }
  0x27   :  { %223 = vmatprep.subr.bf16.mxu0 %v331_v0  ;;  %220 = vmatprep.mubr.msk.f32.mxu0 %vm332_vm0, %v333_v1  ;;  %v52_v3 = vld [vmem:[#allocation6 + $0x8] sm:$0xff]  ;;  %v53_v5 = vld [vmem:[#allocation6 + $0x10] sm:$0xff]  ;;  %v54_v6 = vld [vmem:[#allocation6 + $0x18] sm:$0xff]  ;;  %s334_s17 = smov [#allocation8]  }
  0x28   :  { %v224_v4 = vpack.c.bf16 %v52_v3, %v51_v2  ;;  %v227_v7 = vpack.c.bf16 %v54_v6, %v53_v5  ;;  %v55_v8 = vld [vmem:[#allocation6 + $0x20] sm:$0xff]  ;;  %v56_v9 = vld [vmem:[#allocation6 + $0x28] sm:$0xff]  ;;  %v57_v11 = vld [vmem:[#allocation6 + $0x30] sm:$0xff]  ;;  %s160_s18 = sshll.u32 %s334_s17, 4  ;;  %s161_s18 = int_to_ptr.vmem [resolvable:$true] %s160_s18 }
  0x29   :  { %v230_v10 = vpack.c.bf16 %v56_v9, %v55_v8  ;;  %v58_v12 = vld [vmem:[#allocation6 + $0x38] sm:$0xff]  ;;  %v59_v14 = vld [vmem:[#allocation6 + $0x40] sm:$0xff]  ;;  %v60_v15 = vld [vmem:[#allocation6 + $0x48] sm:$0xff]  ;;  %s299_s19 = scalar_lea.vmem %s161_s18, 128  ;;  %p304_p3 = scmp.lt.s32.totalorder %s161_s18, %s161_s18 }
  0x2a   :  { %225 = vmatpush3.bf16.xpose.msra.mxu0 %v224_v4  ;;  %v233_v13 = vpack.c.bf16 %v58_v12, %v57_v11  ;;  %v236_v16 = vpack.c.bf16 %v60_v15, %v59_v14  ;;  %v61_v17 = vld [vmem:[#allocation6 + $0x50] sm:$0xff]  ;;  %v62_v18 = vld [vmem:[#allocation6 + $0x58] sm:$0xff]  ;;  %v63_v20 = vld [vmem:[#allocation6 + $0x60] sm:$0xff]  ;;  %p300_p2 = scmp.ne.s32.totalorder %s161_s18, %s299_s19  ;;  %p305_p4 = scmp.lt.s32.totalorder %s299_s19, %s299_s19 }
  0x2b   :  { %226 = vmatprep.subr.bf16.mxu0 %v331_v0  ;;  %v239_v19 = vpack.c.bf16 %v62_v18, %v61_v17  ;;  %v64_v21 = vld [vmem:[#allocation6 + $0x68] sm:$0xff]  ;;  %v65_v23 = vld [vmem:[#allocation6 + $0x70] sm:$0xff]  ;;  %v66_v24 = vld [vmem:[#allocation6 + $0x78] sm:$0xff] }
  0x2c   :  { %v242_v22 = vpack.c.bf16 %v64_v21, %v63_v20  ;;  %v245_v25 = vpack.c.bf16 %v66_v24, %v65_v23  ;;  %v50_v26 = vld [vmem:[#allocation3] sm:$0xff]  ;;  %p306_p5 = por %p305_p4, %p304_p3 }
  0x2d   :  { %v170_v27 = vld [vmem:[%s411_s2] ss:$0 sm:$0xff] }
  0x2e   :  { %v151_v29 = vld [vmem:[%s412_s3] sm:$0xff]  ;;  %p307_p6 = pnand %p306_p5, %p300_p2 }
  0x32   :  { %228 = vmatpush3.bf16.xpose.msra.mxu0 %v227_v7 }
  0x33   :  { %229 = vmatprep.subr.bf16.mxu0 %v331_v0 }
  0x3a   :  { %231 = vmatpush3.bf16.xpose.msra.mxu0 %v230_v10 }
  0x3b   :  { %232 = vmatprep.subr.bf16.mxu0 %v331_v0 }
  0x42   :  { %234 = vmatpush3.bf16.xpose.msra.mxu0 %v233_v13 }
  0x43   :  { %235 = vmatprep.subr.bf16.mxu0 %v331_v0 }
  0x4a   :  { %237 = vmatpush3.bf16.xpose.msra.mxu0 %v236_v16 }
  0x4b   :  { %238 = vmatprep.subr.bf16.mxu0 %v331_v0 }
  0x52   :  { %240 = vmatpush3.bf16.xpose.msra.mxu0 %v239_v19 }
  0x53   :  { %241 = vmatprep.subr.bf16.mxu0 %v331_v0 }
  0x5a   :  { %243 = vmatpush3.bf16.xpose.msra.mxu0 %v242_v22 }
  0x5b   :  { %244 = vmatprep.subr.bf16.mxu0 %v331_v0 }
  0x62   :  { %246 = vmatpush3.bf16.xpose.msra.mxu0 %v245_v25 }
  0x69   :  { %221 = vmatmul.mubr.f32.vlgmr.msra.gmra.mrb[0].mxu0 %v50_v26 }
 0x13c   :  { %v133_v28 = vpop.f32.mrb[0].mxu0 }
 0x13d   :  { %v150_v30 = vadd.f32 %v170_v27, %v133_v28  ;;  %v222_v31 = vpop.f32.mrb[1].mxu0 }
 0x13f   :  { %v152_v32 = vadd.f32 %v151_v29, %v150_v30 }
 0x141   :  { %153 = vst [vmem:[#allocation8] sm:$0xff] %v152_v32 }
 0x142   :  { %310 = shalt.err (!%p307_p6)
}
 0x143   :  { %s311_s21 = scalar_lea.hbm %s413_s4, 128 }
 0x144   :  { %p312_p7 = scmp.ne.s32.totalorder %s413_s4, %s311_s21  ;;  %p315_p8 = scmp.lt.u32.totalorder %s311_s21, %s413_s4 }
 0x146   :  { %p317_p9 = pnand %p315_p8, %p312_p7 }
 0x148   :  { %320 = shalt.err (!%p317_p9)
}
 0x149   :  { %163 = dma.vmem_to_hbm [thread:$0]  %s161_s18, 128, %s413_s4, [#allocation5]  }
 0x14a   :  { %325 = dma.done.wait [#allocation5], 128  }
 0x14b   :  { %326 = vsyncadd [#allocation5], 4294967168 }
 0x14c   :  { %167 = vsyncpa [#allocation4], 1 }
 0x14d   :  { %168 = vsyncpa [#allocation7], 1 }
 0x14e   :  { %169 = vsyncpa [#allocation5], 1 }

</bundles_post_ra>
